<compile_context>
chip_gen: v7x
topology: tpu7x:2x2x1
jax: 0.10.0
libtpu: 0.0.40
codegen_flags: <defaults>
</compile_context>

<pallas_src>
import functools
import math

import numpy as np
import jax
import jax.numpy as jnp
from jax.experimental import pallas as pl
from jax.experimental.pallas import tpu as pltpu


def _round_up(x, m):
    return (x + m - 1) // m * m


def _pack_factor(emb_dim):
    """Smallest P such that P * emb_dim is a multiple of 128 lanes."""
    return 128 // math.gcd(emb_dim, 128)


# ----------------------------------------------------------------------------
# Pallas kernel: one row-tile of the packed embedding lookup.
#   idx_ref   : (TR, PACK)                int32 token ids (TR = TN / PACK)
#   table_ref : (PACK*V_pad, PACK*E)      block-diagonal packed table
#   out_ref   : (TR, PACK*E)              PACK embeddings per 128-lane-dense row
# ----------------------------------------------------------------------------
def emb_lookup_kernel(idx_ref, table_ref, out_ref, *, pack, vocab_pad):
    idx = idx_ref[...]                                   # (TR, PACK) int32
    tr = idx.shape[0]
    k = pack * vocab_pad
    dt = table_ref.dtype                                 # bf16 table -> bf16 MXU operands

    lane_ids = jax.lax.broadcasted_iota(jnp.int32, (tr, k), 1)
    onehot = jnp.zeros((tr, k), dtype=dt)
    for j in range(pack):                                # small compile-time constant
        target = idx[:, j:j + 1] + j * vocab_pad         # (TR, 1)
        onehot = onehot + (lane_ids == target).astype(dt)

    acc = jnp.dot(onehot, table_ref[...],                # exact: 0/1 LHS, one hit per col
                  preferred_element_type=jnp.float32)
    out_ref[...] = acc.astype(out_ref.dtype)


# ----------------------------------------------------------------------------
# One-time parameter construction (mirrors nn.Embedding init, row 0 zeroed) and
# table packing — hoisted out of the per-call forward path.
# ----------------------------------------------------------------------------
def pack_embedding_table(emb_table):
    v, e = emb_table.shape
    pack = _pack_factor(e)
    v_pad = _round_up(v, 8)
    t = jnp.pad(emb_table, ((0, v_pad - v), (0, 0)))
    packed = jnp.kron(jnp.eye(pack, dtype=emb_table.dtype), t)   # (pack*v_pad, pack*e)
    return packed, pack, v_pad


def init_char_embeddings(key, emb_dim, num_embs, dtype=jnp.float32):
    emb = jax.random.normal(key, (num_embs, emb_dim), dtype)
    emb = emb.at[0].set(0)                                       # padding_idx=0
    packed, pack, v_pad = pack_embedding_table(emb)
    return {"table": emb, "packed": packed, "pack": pack, "vocab_pad": v_pad}


# ----------------------------------------------------------------------------
# Forward: out[..., :] = table[x[...], :]
# ----------------------------------------------------------------------------
def char_embeddings_forward(x, params, *, row_tile=1024, min_pallas_rows=256):
    emb_table = params["table"]
    packed = params["packed"]
    pack, v_pad = params["pack"], params["vocab_pad"]
    v, e = emb_table.shape
    out_dtype = emb_table.dtype
    itemsize = jnp.dtype(out_dtype).itemsize

    n = int(np.prod(x.shape)) if x.ndim else 1
    packed_bytes = packed.size * itemsize
    if n < min_pallas_rows or packed_bytes > 16 * 1024 * 1024:
        # Tiny batches: pallas_call launch + pad/reshape overhead dominates.
        # TODO(synk): very large vocabularies (packed table > VMEM budget) would need
        # a scalar-prefetch / manual-DMA row gather instead of the resident table.
        return jnp.take(emb_table, x.astype(jnp.int32), axis=0)

    idx_flat = x.reshape(-1).astype(jnp.int32)

    # Row alignment unit: output tile has TN/pack rows; keep them sublane-aligned
    # for the output dtype (8 rows f32, 16 rows bf16, 32 rows int8/fp8).
    sub = {4: 8, 2: 16, 1: 32}.get(itemsize, 8)
    unit = sub * pack

    # Big tiles to amortize per-step overhead (~0.35 us), but keep >= 2 grid
    # steps so both v7x TensorCores get work via the "parallel" axis.
    tn = min(_round_up(row_tile, unit), _round_up(max((n + 1) // 2, 1), unit))
    tn = max(tn, unit)
    n_pad = _round_up(n, tn)
    idx2d = jnp.pad(idx_flat, (0, n_pad - n)).reshape(n_pad // pack, pack)

    tr = tn // pack
    grid = (n_pad // tn,)

    cost = pl.CostEstimate(
        flops=2 * n_pad * v_pad * pack * e,
        transcendentals=0,
        bytes_accessed=n_pad * e * itemsize + n_pad * 4 + packed_bytes,
    )

    out = pl.pallas_call(
        functools.partial(emb_lookup_kernel, pack=pack, vocab_pad=v_pad),
        out_shape=jax.ShapeDtypeStruct((n_pad // pack, pack * e), out_dtype),
        grid_spec=pltpu.PrefetchScalarGridSpec(
            num_scalar_prefetch=0,
            grid=grid,
            in_specs=[
                pl.BlockSpec((tr, pack), lambda i: (i, 0)),              # index tile
                pl.BlockSpec((pack * v_pad, pack * e), lambda i: (0, 0)),  # whole packed table
            ],
            out_specs=pl.BlockSpec((tr, pack * e), lambda i: (i, 0)),
        ),
        compiler_params=pltpu.CompilerParams(
            dimension_semantics=("parallel",)),                          # megacore / v7x
        cost_estimate=cost,
    )(idx2d, packed)

    out = out.reshape(n_pad, e)                                          # free row-major reshape
    if n_pad != n:
        out = out[:n]
    return out.reshape(*x.shape, e)


# ----------------------------------------------------------------------------
# Example run
# ----------------------------------------------------------------------------
if __name__ == "__main__":
    EMB_DIM, NUM_EMBS = 16, 30

    key = jax.random.PRNGKey(0)
    k_tab, k_idx = jax.random.split(key)
    params = init_char_embeddings(k_tab, EMB_DIM, NUM_EMBS)

    # ---- Pallas path (N = 8*48 = 384 tokens >= min_pallas_rows) ------------
    B, T = 8, 48
    inds = jax.random.randint(k_idx, (B, T), 1, NUM_EMBS, dtype=jnp.int32)
    inds = inds.at[:, -4:].set(0)                     # trailing pad tokens

    out = char_embeddings_forward(inds, params)
    jax.block_until_ready(out)

    ref = jnp.take(params["table"], inds, axis=0)
    assert out.shape == (B, T, EMB_DIM)
    assert out.dtype == params["table"].dtype
    np.testing.assert_allclose(np.asarray(out), np.asarray(ref),
                               rtol=1e-5, atol=1e-5)
    assert np.all(np.asarray(out)[:, -4:, :] == 0.0)  # padding_idx=0 rows are zero
    assert np.all(np.isfinite(np.asarray(out)))

    # ---- Tiny-input fallback path (XLA gather) ------------------------------
    small = jnp.array([[5, 6, 7, 1, 8, 9, 1, 10, 11, 12, 0, 0]], dtype=jnp.int32)
    out_small = char_embeddings_forward(small, params)
    jax.block_until_ready(out_small)
    np.testing.assert_allclose(
        np.asarray(out_small),
        np.asarray(jnp.take(params["table"], small, axis=0)),
        rtol=1e-5, atol=1e-5)

    print("KERNEL_OK")
</pallas_src>

<mosaic_0001>
module attributes {stable_mosaic.version = 11 : i64} {
  func.func @emb_lookup_kernel(%arg0: i32, %arg1: memref<24x8xi32, #tpu.memory_space<vmem>>, %arg2: memref<256x128xf32, #tpu.memory_space<vmem>>, %arg3: memref<24x128xf32, #tpu.memory_space<vmem>>) attributes {dimension_semantics = [#tpu.dimension_semantics<parallel>], iteration_bounds = array<i64: 2>, scalar_prefetch = 0 : i64, scratch_operands = 0 : i64, tpu.core_type = #tpu.core_type<tc>, window_params = [{transform_indices = @transform_0, window_bounds = array<i64: 24, 8>}, {pipeline_mode = #tpu.pipeline_mode<synchronous>, transform_indices = @transform_1, window_bounds = array<i64: 256, 128>}, {transform_indices = @transform_2, window_bounds = array<i64: 24, 128>}]} {
    %c0 = arith.constant 0 : index
    %c0_0 = arith.constant 0 : index
    %0 = vector.load %arg1[%c0, %c0_0] : memref<24x8xi32, #tpu.memory_space<vmem>>, vector<24x8xi32>
    %1 = tpu.iota {dimensions = array<i32: 1>} : vector<24x256xi32>
    %cst = arith.constant 0.000000e+00 : f32
    %2 = vector.broadcast %cst : f32 to vector<24x256xf32>
    %3 = vector.extract_strided_slice %0 {offsets = [0, 0], sizes = [24, 1], strides = [1, 1]} : vector<24x8xi32> to vector<24x1xi32>
    %c0_i32 = arith.constant 0 : i32
    %4 = vector.broadcast %c0_i32 : i32 to vector<24x1xi32>
    %5 = arith.addi %3, %4 : vector<24x1xi32>
    %6 = vector.broadcast %5 : vector<24x1xi32> to vector<24x256xi32>
    %7 = arith.cmpi eq, %1, %6 : vector<24x256xi32>
    %8 = arith.extui %7 : vector<24x256xi1> to vector<24x256xi32>
    %9 = arith.sitofp %8 : vector<24x256xi32> to vector<24x256xf32>
    %10 = arith.addf %2, %9 : vector<24x256xf32>
    %11 = vector.extract_strided_slice %0 {offsets = [0, 1], sizes = [24, 1], strides = [1, 1]} : vector<24x8xi32> to vector<24x1xi32>
    %c32_i32 = arith.constant 32 : i32
    %12 = vector.broadcast %c32_i32 : i32 to vector<24x1xi32>
    %13 = arith.addi %11, %12 : vector<24x1xi32>
    %14 = vector.broadcast %13 : vector<24x1xi32> to vector<24x256xi32>
    %15 = arith.cmpi eq, %1, %14 : vector<24x256xi32>
    %16 = arith.extui %15 : vector<24x256xi1> to vector<24x256xi32>
    %17 = arith.sitofp %16 : vector<24x256xi32> to vector<24x256xf32>
    %18 = arith.addf %10, %17 : vector<24x256xf32>
    %19 = vector.extract_strided_slice %0 {offsets = [0, 2], sizes = [24, 1], strides = [1, 1]} : vector<24x8xi32> to vector<24x1xi32>
    %c64_i32 = arith.constant 64 : i32
    %20 = vector.broadcast %c64_i32 : i32 to vector<24x1xi32>
    %21 = arith.addi %19, %20 : vector<24x1xi32>
    %22 = vector.broadcast %21 : vector<24x1xi32> to vector<24x256xi32>
    %23 = arith.cmpi eq, %1, %22 : vector<24x256xi32>
    %24 = arith.extui %23 : vector<24x256xi1> to vector<24x256xi32>
    %25 = arith.sitofp %24 : vector<24x256xi32> to vector<24x256xf32>
    %26 = arith.addf %18, %25 : vector<24x256xf32>
    %27 = vector.extract_strided_slice %0 {offsets = [0, 3], sizes = [24, 1], strides = [1, 1]} : vector<24x8xi32> to vector<24x1xi32>
    %c96_i32 = arith.constant 96 : i32
    %28 = vector.broadcast %c96_i32 : i32 to vector<24x1xi32>
    %29 = arith.addi %27, %28 : vector<24x1xi32>
    %30 = vector.broadcast %29 : vector<24x1xi32> to vector<24x256xi32>
    %31 = arith.cmpi eq, %1, %30 : vector<24x256xi32>
    %32 = arith.extui %31 : vector<24x256xi1> to vector<24x256xi32>
    %33 = arith.sitofp %32 : vector<24x256xi32> to vector<24x256xf32>
    %34 = arith.addf %26, %33 : vector<24x256xf32>
    %35 = vector.extract_strided_slice %0 {offsets = [0, 4], sizes = [24, 1], strides = [1, 1]} : vector<24x8xi32> to vector<24x1xi32>
    %c128_i32 = arith.constant 128 : i32
    %36 = vector.broadcast %c128_i32 : i32 to vector<24x1xi32>
    %37 = arith.addi %35, %36 : vector<24x1xi32>
    %38 = vector.broadcast %37 : vector<24x1xi32> to vector<24x256xi32>
    %39 = arith.cmpi eq, %1, %38 : vector<24x256xi32>
    %40 = arith.extui %39 : vector<24x256xi1> to vector<24x256xi32>
    %41 = arith.sitofp %40 : vector<24x256xi32> to vector<24x256xf32>
    %42 = arith.addf %34, %41 : vector<24x256xf32>
    %43 = vector.extract_strided_slice %0 {offsets = [0, 5], sizes = [24, 1], strides = [1, 1]} : vector<24x8xi32> to vector<24x1xi32>
    %c160_i32 = arith.constant 160 : i32
    %44 = vector.broadcast %c160_i32 : i32 to vector<24x1xi32>
    %45 = arith.addi %43, %44 : vector<24x1xi32>
    %46 = vector.broadcast %45 : vector<24x1xi32> to vector<24x256xi32>
    %47 = arith.cmpi eq, %1, %46 : vector<24x256xi32>
    %48 = arith.extui %47 : vector<24x256xi1> to vector<24x256xi32>
    %49 = arith.sitofp %48 : vector<24x256xi32> to vector<24x256xf32>
    %50 = arith.addf %42, %49 : vector<24x256xf32>
    %51 = vector.extract_strided_slice %0 {offsets = [0, 6], sizes = [24, 1], strides = [1, 1]} : vector<24x8xi32> to vector<24x1xi32>
    %c192_i32 = arith.constant 192 : i32
    %52 = vector.broadcast %c192_i32 : i32 to vector<24x1xi32>
    %53 = arith.addi %51, %52 : vector<24x1xi32>
    %54 = vector.broadcast %53 : vector<24x1xi32> to vector<24x256xi32>
    %55 = arith.cmpi eq, %1, %54 : vector<24x256xi32>
    %56 = arith.extui %55 : vector<24x256xi1> to vector<24x256xi32>
    %57 = arith.sitofp %56 : vector<24x256xi32> to vector<24x256xf32>
    %58 = arith.addf %50, %57 : vector<24x256xf32>
    %59 = vector.extract_strided_slice %0 {offsets = [0, 7], sizes = [24, 1], strides = [1, 1]} : vector<24x8xi32> to vector<24x1xi32>
    %c224_i32 = arith.constant 224 : i32
    %60 = vector.broadcast %c224_i32 : i32 to vector<24x1xi32>
    %61 = arith.addi %59, %60 : vector<24x1xi32>
    %62 = vector.broadcast %61 : vector<24x1xi32> to vector<24x256xi32>
    %63 = arith.cmpi eq, %1, %62 : vector<24x256xi32>
    %64 = arith.extui %63 : vector<24x256xi1> to vector<24x256xi32>
    %65 = arith.sitofp %64 : vector<24x256xi32> to vector<24x256xf32>
    %66 = arith.addf %58, %65 : vector<24x256xf32>
    %c0_1 = arith.constant 0 : index
    %c0_2 = arith.constant 0 : index
    %67 = vector.load %arg2[%c0_1, %c0_2] : memref<256x128xf32, #tpu.memory_space<vmem>>, vector<256x128xf32>
    %cst_3 = arith.constant dense<0.000000e+00> : vector<24x128xf32>
    %68 = tpu.matmul %66, %67, %cst_3 {dimension_numbers = #tpu.dot_dimension_numbers<[1], [0], [0], [1], [0, 0, 1, 1], [], []>} : vector<24x256xf32>, vector<256x128xf32>, vector<24x128xf32> -> vector<24x128xf32>
    %c0_4 = arith.constant 0 : index
    %c0_5 = arith.constant 0 : index
    %69 = vector.load %arg3[%c0_4, %c0_5] : memref<24x128xf32, #tpu.memory_space<vmem>>, vector<24x128xf32>
    tpu.vector_store %arg3[%c0_4, %c0_5], %68 {strides = array<i32>} : memref<24x128xf32, #tpu.memory_space<vmem>>, vector<24x128xf32>,
    return
  }
  func.func @transform_0(%arg0: i32) -> (i32, i32) {
    %c0_i32 = arith.constant 0 : i32
    %c0_i32_0 = arith.constant 0 : i32
    return %arg0, %c0_i32 : i32, i32
  }
  func.func @transform_1(%arg0: i32) -> (i32, i32) {
    %c0_i32 = arith.constant 0 : i32
    %c0_i32_0 = arith.constant 0 : i32
    %c0_i32_1 = arith.constant 0 : i32
    return %c0_i32, %c0_i32_0 : i32, i32
  }
  func.func @transform_2(%arg0: i32) -> (i32, i32) {
    %c0_i32 = arith.constant 0 : i32
    %c0_i32_0 = arith.constant 0 : i32
    return %arg0, %c0_i32 : i32, i32
  }
}

</mosaic_0001>

<bundles_post_ra>
// kernel: tpu_custom_call.1
= control target key start
LH: loop header
LB: loop body
LE: loop exit
PB: predicated region body
PF: predicated region fallthrough
CT: control target
= control target key end

     0   :  { %7 = vsyncpa [#allocation3], 0  ;;  %s1310_s0 = inlined_call_operand.vmem [shape: s32[48,8], index: 0, kind: input, shape index: {}]   ;;  %s1311_s1 = inlined_call_operand.hbm [shape: f32[256,128], index: 1, kind: input, shape index: {}]   ;;  %s1312_s2 = inlined_call_operand.hbm [shape: f32[48,128], index: 2, kind: output, shape index: {}]  }
   0x1   :  { %8 = vsyncpa [#allocation4], 0 }
   0x2   :  { %10 = vsyncpa [#allocation4 + $0x1], 0  ;;  %s1008_s9 = smov 0   ;;  %s1010_s10 = smov 0  }
   0x3   :  { %s1012_s11 = smov 0   ;;  %s1014_s12 = smov 0  }
   0x4 LB: > { %s1029_s13 = sadd.s32 4294967295, %s976_s12   ;;  %s654_s14 = sadd.s32 4294967294, %s976_s12   ;;  %s976_s12 = sphi %s1014_s12, %s1328_s12   ;;  %s972_s11 = sphi %s1012_s11, %s1327_s11   ;;  %s968_s10 = sphi %s1010_s10, %s1326_s10   ;;  %s964_s9 = sphi %s1008_s9, %s1325_s9  }
   0x5   : > { %s1033_s15 = sadd.s32 1, %s976_s12   ;;  %s70_s16 = sadd.s32 1, %s972_s11 }
   0x6   : > { %s67_s17 = ssub.s32 %s976_s12, %s1033_s15  ;;  %p80_p0 = scmp.ne.s32.totalorder %s972_s11, %s968_s10 }
   0x7   : > { %p68_p1 = scmp.eq.s32.totalorder %s67_s17, 0  ;;  %p81_p2 = scmp.eq.s32.totalorder %s1029_s13, 1 }
   0x8   : > { %p86_p3 = scmp.ne.s32.totalorder %s968_s10, %s964_s9  ;;  %p87_p4 = scmp.eq.s32.totalorder %s654_s14, 1 }
   0x9   : > { %s1044_s18 = scalar_select %p68_p1, %s972_s11, %s70_s16  }
   0xa   : > { %p1046_p5 = por %p81_p2, %p80_p0  ;;  %p1050_p6 = por %p87_p4, %p86_p3 }
   0xb   : > { %p655_p7 = scmp.ge.s32.totalorder %s976_s12, 1  ;;  %p94_p8 = scmp.lt.s32.totalorder %s976_s12, 3 }
   0xc   : > { %s1316_s19 = scalar_select %p1046_p5, 1, 0 }
   0xd   : > { %s1317_s20 = scalar_select %p1050_p6, 1, 0 }
   0xe   : > { %p1313_p9 = scmp.eq.s32.totalorder %s1029_s13, 0  ;;  %p1057_p10 = pnand %p655_p7, %p94_p8 }
   0xf   : > { %s978_s22 = smov [#allocation2]   ;;  %s882_s27 = scalar_lea.hbm %s1311_s1, 4096 }
  0x10   : > { %s1318_s21 = scalar_select %p1057_p10, 1, 0 }
  0x11   : > { %s106_s23 = sshll.u32 %s978_s22, 4  ;;  %p809_p11 = pneg %p1057_p10  ;;  %s107_s23 = int_to_ptr.vmem [resolvable:$true] %s106_s23 }
  0x12   : > { %p883_p13 = scmp.ne.s32.totalorder %s1311_s1, %s882_s27  ;;  %p889_p3 = scmp.lt.u32.totalorder %s882_s27, %s1311_s1 }
  0x13   : > { %p1065_p12 = pnand %p1313_p9, %p809_p11 }
  0x15   : > { %p884_p0 = pneg %p1065_p12 }
  0x17   : > { %p885_p1 = pnand %p884_p0, %p883_p13 }
  0x19   : > { %p886_p2 = pneg %p885_p1 }
  0x1b   : > { %p891_p4 = pnand %p889_p3, %p886_p2 }
  0x1d   : > { %894 = shalt.err (!%p891_p4)
}
  0x1e   : > { %s895_s4 = scalar_lea.vmem %s107_s23, 4096  ;;  %p903_p9 = scmp.lt.s32.totalorder %s107_s23, %s107_s23 }
  0x1f   : > { %p896_p7 = scmp.ne.s32.totalorder %s107_s23, %s895_s4  ;;  %p904_p6 = scmp.lt.s32.totalorder %s895_s4, %s895_s4 }
  0x21   : > { %p898_p8 = pnand %p896_p7, %p884_p0  ;;  %p905_p5 = por %p904_p6, %p903_p9 }
  0x23   : > { %p899_p11 = pneg %p898_p8 }
  0x25   : > { %p906_p10 = pnand %p905_p5, %p899_p11 }
  0x27   : > { %909 = shalt.err (!%p906_p10)
}
  0x28   : > { %s979_s5 = smov 128   ;;  %s980_s6 = smov 8  }
  0x29   : > { %812 = dma.hbm_to_vmem [thread:$0]  (!%p1065_p12), %s1311_s1, 4096, %s107_s23, [#allocation3], %s979_s5, %s979_s5, %s980_s6  }
  0x2a   : > { %p1320_p13 = scmp.ne.s32.totalorder %s1318_s21, 0 }
  0x2b   : > { %p1321_p1 = scmp.eq.s32.totalorder (!%p1320_p13), %s1029_s13, 0 }
  0x2c   : > { %131 = sbr.rel (%p1320_p13) target bundleno = 487 (0x1e7), region = 28 }
  0x33   : > { %955 = dma.done.wait (%p1321_p1), [#allocation3], 4096   ;;  %p1322_p0 = pmov %p1321_p1 }
  0x34   : > { %s153_s14 = smul.u32 3, %s1029_s13  ;;  %v981_v0 = vmov 0   ;;  %v982_v5 = vmov 1   ;;  %v467_v6 = vld [vmem:[#allocation2 + $0x80] sm:$0xff]  ;;  %v468_v7 = vld [vmem:[#allocation2 + $0x88] sm:$0xff]  ;;  %v983_v14 = vmov 2  }
  0x35   : > { %957 = vsyncadd (%p1322_p0), [#allocation3], 4294963200  ;;  %867 = vset.pattern.permute.xlu1 %v981_v0  ;;  %866 = vset.pattern.permute.xlu0 %v981_v0  ;;  %v754_v10 = vpack.c.bf16 %v468_v7, %v467_v6  ;;  %v451_v11 = vld [vmem:[#allocation2] sm:$0xff]  ;;  %v452_v12 = vld [vmem:[#allocation2 + $0x8] sm:$0xff]  ;;  %v984_v25 = vmov 3   ;;  %v985_v37 = vmov 4  }
  0x36   : > { %p154_p5 = scmp.lt.s32.totalorder %s153_s14, 5  ;;  %v756_v13 = vpack.c.bf16 %v452_v12, %v451_v11  ;;  %v469_v15 = vld [vmem:[#allocation2 + $0x90] sm:$0xff]  ;;  %v470_v16 = vld [vmem:[#allocation2 + $0x98] sm:$0xff]  ;;  %v471_v23 = vld [vmem:[#allocation2 + $0xa0] sm:$0xff]  ;;  %v986_v47 = vmov 5   ;;  %v987_v56 = vmov 6  }
  0x37   : > { %786 = vmatprep.subr.bf16.mxu1 %v754_v10  ;;  %755 = vmatprep.subr.bf16.mxu0 %v754_v10  ;;  %v758_v17 = vpack.c.bf16 %v470_v16, %v469_v15  ;;  %v453_v18 = vld [vmem:[#allocation2 + $0x10] sm:$0xff]  ;;  %v454_v19 = vld [vmem:[#allocation2 + $0x18] sm:$0xff]  ;;  %v472_v24 = vld [vmem:[#allocation2 + $0xa8] sm:$0xff]  ;;  %v988_v6 = vmov 7   ;;  %s150_s21 = sand.u32 1, %s968_s10   ;;  %s712_s26 = smul.u32 384, %s1029_s13 }
  0x38   : > { %s1330_s14 = smov (!%p154_p5, %s153_s14), 5  ;;  %794 = vmatpush3.bf16.msra.mxu1 %v756_v13  ;;  %v760_v22 = vpack.c.bf16 %v454_v19, %v453_v18  ;;  %757 = vmatpush3.bf16.msra.mxu0 %v756_v13  ;;  %v762_v26 = vpack.c.bf16 %v472_v24, %v471_v23  ;;  %v455_v27 = vld [vmem:[#allocation2 + $0x20] sm:$0xff]  ;;  %v456_v28 = vld [vmem:[#allocation2 + $0x28] sm:$0xff]  ;;  %v473_v32 = vld [vmem:[#allocation2 + $0xb0] sm:$0xff]  ;;  %s802_s24 = smul.u32 24, %s150_s21 }
  0x39   : > { %s660_s16 = sshll.u32 %s1330_s14, 3  ;;  %787 = vmatprep.subr.bf16.mxu1 %v758_v17  ;;  %759 = vmatprep.subr.bf16.mxu0 %v758_v17  ;;  %v764_v29 = vpack.c.bf16 %v456_v28, %v455_v27  ;;  %v474_v33 = vld [vmem:[#allocation2 + $0xb8] sm:$0xff]  ;;  %v457_v35 = vld [vmem:[#allocation2 + $0x30] sm:$0xff]  ;;  %v475_v41 = vld [vmem:[#allocation2 + $0xc0] sm:$0xff]  ;;  %s1267_s30 = scalar_lea.hbm %s1312_s2, %s712_s26 }
  0x3a   : > { %s157_s23 = scalar_lea.vmem %s1310_s0, %s660_s16  ;;  %v766_v34 = vpack.c.bf16 %v474_v33, %v473_v32  ;;  %v458_v36 = vld [vmem:[#allocation2 + $0x38] sm:$0xff]  ;;  %v476_v42 = vld [vmem:[#allocation2 + $0xc8] sm:$0xff]  ;;  %v459_v44 = vld [vmem:[#allocation2 + $0x40] sm:$0xff]  ;;  %s152_s25 = scalar_lea.vmem [#allocation5], %s802_s24 }
  0x3b   : > { %v1095_v1 = vld [vmem:[%s157_s23 + $0x8] sm:$0xff]  ;;  %v1097_v2 = vld [vmem:[%s157_s23] sm:$0xff]  ;;  %v1101_v3 = vld [vmem:[%s157_s23 + $0x10] sm:$0xff]  ;;  %v768_v38 = vpack.c.bf16 %v458_v36, %v457_v35  ;;  %v770_v43 = vpack.c.bf16 %v476_v42, %v475_v41  ;;  %s580_s27 = sshll.u32 %s152_s25, 4  ;;  %s1269_s3 = scalar_lea.sflag [#allocation4], %s150_s21  ;;  %s1262_s27 = int_to_ptr.vmem [resolvable:$true] %s580_s27 }
  0x3c   : > { %170 = vperm.xlu0 %866, %v1095_v1   ;;  %167 = vperm.xlu1 %867, %v1097_v2   ;;  %v200_v4 = vadd.s32 32, %v1095_v1  ;;  %v236_v8 = vadd.s32 64, %v1095_v1  ;;  %v199_v9 = vadd.s32 32, %v1097_v2  ;;  %v201_v20 = vadd.s32 32, %v1101_v3  ;;  %v460_v45 = vld [vmem:[#allocation2 + $0x48] sm:$0xff]  ;;  %v477_v49 = vld [vmem:[#allocation2 + $0xd0] sm:$0xff] }
  0x3d   : > { %v272_v21 = vadd.s32 96, %v1095_v1  ;;  %795 = vmatpush3.bf16.msra.mxu1 %v760_v22  ;;  %v235_v30 = vadd.s32 64, %v1097_v2  ;;  %v308_v31 = vadd.s32 128, %v1095_v1  ;;  %761 = vmatpush3.bf16.msra.mxu0 %v760_v22  ;;  %v237_v39 = vadd.s32 64, %v1101_v3  ;;  %v478_v50 = vld [vmem:[#allocation2 + $0xd8] sm:$0xff]  ;;  %v461_v53 = vld [vmem:[#allocation2 + $0x50] sm:$0xff] }
  0x3e   : > { %788 = vmatprep.subr.bf16.mxu1 %v762_v26  ;;  %763 = vmatprep.subr.bf16.mxu0 %v762_v26  ;;  %v344_v40 = vadd.s32 160, %v1095_v1  ;;  %v772_v46 = vpack.c.bf16 %v460_v45, %v459_v44  ;;  %v271_v48 = vadd.s32 96, %v1097_v2  ;;  %v380_v51 = vadd.s32 192, %v1095_v1  ;;  %v462_v54 = vld [vmem:[#allocation2 + $0x58] sm:$0xff]  ;;  %v479_v58 = vld [vmem:[#allocation2 + $0xe0] sm:$0xff]  ;;  %v480_v59 = vld [vmem:[#allocation2 + $0xe8] sm:$0xff] }
  0x3f   : > { %v774_v52 = vpack.c.bf16 %v478_v50, %v477_v49  ;;  %v776_v55 = vpack.c.bf16 %v462_v54, %v461_v53  ;;  %v273_v57 = vadd.s32 96, %v1101_v3  ;;  %v778_v60 = vpack.c.bf16 %v480_v59, %v479_v58  ;;  %v463_v61 = vld [vmem:[#allocation2 + $0x60] sm:$0xff]  ;;  %v464_v62 = vld [vmem:[#allocation2 + $0x68] sm:$0xff]  ;;  %v466_v10 = vld [vmem:[#allocation2 + $0x78] sm:$0xff]  ;;  %s910_s4 = scalar_lea.vmem %s1262_s27, 384  ;;  %p1323_p9 = scmp.ne.s32.totalorder %s1316_s19, 0 }
  0x40   : > { %868 = vset.pattern.permute.xlu0 %v982_v5  ;;  %173 = vperm.xlu1 %867, %v1101_v3   ;;  %v416_v63 = vadd.s32 224, %v1095_v1  ;;  %v780_v0 = vpack.c.bf16 %v464_v62, %v463_v61  ;;  %v307_v7 = vadd.s32 128, %v1097_v2  ;;  %v415_v11 = vadd.s32 224, %v1097_v2  ;;  %p911_p6 = scmp.ne.s32.totalorder %s1262_s27, %s910_s4  ;;  %s990_s13 = smov [#allocation5]  }
  0x41   : > { %206 = vperm.xlu0 %868, %v200_v4   ;;  %796 = vmatpush3.bf16.msra.mxu1 %v764_v29  ;;  %v481_v4 = vld [vmem:[#allocation2 + $0xf0] sm:$0xff]  ;;  %v309_v1 = vadd.s32 128, %v1101_v3  ;;  %v343_v13 = vadd.s32 160, %v1097_v2  ;;  %v379_v15 = vadd.s32 192, %v1097_v2  ;;  %v381_v16 = vadd.s32 192, %v1101_v3  ;;  %s914_s5 = sshll.u32 %s990_s13, 4  ;;  %s915_s5 = int_to_ptr.vmem [resolvable:$false] %s914_s5 }
  0x42   : > { %789 = vmatprep.subr.bf16.mxu1 %v766_v34  ;;  %765 = vmatpush3.bf16.msra.mxu0 %v764_v29  ;;  %v417_v17 = vadd.s32 224, %v1101_v3  ;;  %v163_v22 = vlaneseq  ;;  %v989_v29 = vmov 0.0   ;;  %p912_p10 = pnand %p911_p6, %p1323_p9  ;;  %s916_s6 = scalar_lea.vmem %s915_s5, 768 }
  0x43   : > { %767 = vmatprep.subr.bf16.mxu0 %v766_v34  ;;  %p917_p2 = scmp.lt.s32.totalorder %s1262_s27, %s915_s5  ;;  %p918_p3 = scmp.lt.s32.totalorder %s916_s6, %s910_s4 }
  0x44   : > { %869 = vset.pattern.permute.xlu1 %v983_v14  ;;  %v1133_v2 = vand.u32 127, %v163_v22  ;;  %p913_p12 = pneg %p912_p10 }
  0x45   : > { %242 = vperm.xlu1 %869, %v236_v8   ;;  %203 = vperm.xlu0 %868, %v199_v9   ;;  %v465_v9 = vld [vmem:[#allocation2 + $0x70] sm:$0xff]  ;;  %p919_p4 = por %p918_p3, %p917_p2 }
  0x46   : > { %797 = vmatpush3.bf16.msra.mxu1 %v768_v38  ;;  %769 = vmatpush3.bf16.msra.mxu0 %v768_v38  ;;  %v784_v12 = vpack.c.bf16 %v466_v10, %v465_v9  ;;  %v1138_v27 = vadd.s32 128, %v1133_v2 }
  0x47   : > { %790 = vmatprep.subr.bf16.mxu1 %v770_v43  ;;  %771 = vmatprep.subr.bf16.mxu0 %v770_v43  ;;  %p920_p7 = pnand %p919_p4, %p913_p12 }
  0x49   : > { %870 = vset.pattern.permute.xlu1 %v982_v5  ;;  %871 = vset.pattern.permute.xlu0 %v984_v25  ;;  %v482_v5 = vld [vmem:[#allocation2 + $0xf8] sm:$0xff] }
  0x4a   : > { %209 = vperm.xlu1 %870, %v201_v20   ;;  %278 = vperm.xlu0 %871, %v272_v21   ;;  %v782_v8 = vpack.c.bf16 %v482_v5, %v481_v4 }
  0x4b   : > { %798 = vmatpush3.bf16.msra.mxu1 %v772_v46  ;;  %773 = vmatpush3.bf16.msra.mxu0 %v772_v46 }
  0x4c   : > { %791 = vmatprep.subr.bf16.mxu1 %v774_v52  ;;  %775 = vmatprep.subr.bf16.mxu0 %v774_v52 }
  0x4e   : > { %872 = vset.pattern.permute.xlu1 %v983_v14  ;;  %873 = vset.pattern.permute.xlu0 %v985_v37  ;;  %v345_v14 = vadd.s32 160, %v1101_v3 }
  0x4f   : > { %239 = vperm.xlu1 %872, %v235_v30   ;;  %314 = vperm.xlu0 %873, %v308_v31  }
  0x50   : > { %799 = vmatpush3.bf16.msra.mxu1 %v776_v55  ;;  %777 = vmatpush3.bf16.msra.mxu0 %v776_v55 }
  0x51   : > { %792 = vmatprep.subr.bf16.mxu1 %v778_v60  ;;  %779 = vmatprep.subr.bf16.mxu0 %v778_v60 }
  0x53   : > { %245 = vperm.xlu1 %872, %v237_v39   ;;  %875 = vset.pattern.permute.xlu0 %v986_v47 }
  0x54   : > { %350 = vperm.xlu0 %875, %v344_v40   ;;  %800 = vmatpush3.bf16.msra.mxu1 %v780_v0 }
  0x55   : > { %793 = vmatprep.subr.bf16.mxu1 %v782_v8  ;;  %781 = vmatpush3.bf16.msra.mxu0 %v780_v0 }
  0x56   : > { %783 = vmatprep.subr.bf16.mxu0 %v782_v8 }
  0x57   : > { %874 = vset.pattern.permute.xlu1 %v984_v25 }
  0x58   : > { %275 = vperm.xlu1 %874, %v271_v48   ;;  %877 = vset.pattern.permute.xlu0 %v987_v56 }
  0x59   : > { %386 = vperm.xlu0 %877, %v380_v51   ;;  %801 = vmatpush3.bf16.msra.mxu1 %v784_v12 }
  0x5a   : > { %785 = vmatpush3.bf16.msra.mxu0 %v784_v12 }
  0x5c   : > { %281 = vperm.xlu1 %874, %v273_v57  }
  0x5d   : > { %879 = vset.pattern.permute.xlu0 %v988_v6 }
  0x5e   : > { %422 = vperm.xlu0 %879, %v416_v63  }
  0x60   : > { %876 = vset.pattern.permute.xlu1 %v985_v37 }
  0x61   : > { %311 = vperm.xlu1 %876, %v307_v7  }
  0x62   : > { %419 = vperm.xlu0 %879, %v415_v11  }
  0x65   : > { %317 = vperm.xlu1 %876, %v309_v1  }
  0x69   : > { %878 = vset.pattern.permute.xlu1 %v986_v47 }
  0x6a   : > { %347 = vperm.xlu1 %878, %v343_v13  }
  0x6e   : > { %353 = vperm.xlu1 %878, %v345_v14  }
  0x72   : > { %880 = vset.pattern.permute.xlu1 %v987_v56 }
  0x73   : > { %383 = vperm.xlu1 %880, %v379_v15  }
  0x77   : > { %389 = vperm.xlu1 %880, %v381_v16  }
  0x7b   : > { %881 = vset.pattern.permute.xlu1 %v988_v6 }
  0x7c   : > { %425 = vperm.xlu1 %881, %v417_v17  }
  0xbb   : > { %v1127_v18 = vpop.permute.xlu1 %167  ;;  %v171_v19 = vpop.permute.xlu0 %170 }
  0xbc   : > { %vm177_vm0 = vcmp.eq.s32.totalorder %v1133_v2, %v171_v19  ;;  %vm178_vm1 = vcmp.eq.s32.totalorder %v1138_v27, %v171_v19 }
  0xbd   : > { %v663_v30 = vsel %vm177_vm0, 1.0, %v989_v29  ;;  %v664_v31 = vsel %vm178_vm1, 1.0, %v989_v29 }
  0xbf   : > { %v1129_v20 = vpop.permute.xlu1 %173 }
  0xc0   : > { %v207_v21 = vpop.permute.xlu0 %206 }
  0xc1   : > { %vm213_vm2 = vcmp.eq.s32.totalorder %v1133_v2, %v207_v21  ;;  %vm214_vm3 = vcmp.eq.s32.totalorder %v1138_v27, %v207_v21 }
  0xc2   : > { %v669_v32 = vsel %vm213_vm2, 1.0, %v989_v29  ;;  %v670_v33 = vsel %vm214_vm3, 1.0, %v989_v29  ;;  %vm175_vm2 = vcmp.eq.s32.totalorder %v1133_v2, %v1127_v18  ;;  %vm176_vm3 = vcmp.eq.s32.totalorder %v1138_v27, %v1127_v18 }
  0xc3   : > { %v231_v34 = vadd.f32 %v669_v32, %v663_v30  ;;  %v232_v35 = vadd.f32 %v670_v33, %v664_v31  ;;  %v661_v9 = vsel %vm175_vm2, 1.0, %v989_v29  ;;  %v662_v10 = vsel %vm176_vm3, 1.0, %v989_v29 }
  0xc4   : > { %v243_v23 = vpop.permute.xlu1 %242  ;;  %v1131_v24 = vpop.permute.xlu0 %203 }
  0xc5   : > { %vm249_vm4 = vcmp.eq.s32.totalorder %v1133_v2, %v243_v23  ;;  %vm250_vm5 = vcmp.eq.s32.totalorder %v1138_v27, %v243_v23  ;;  %vm211_vm0 = vcmp.eq.s32.totalorder %v1133_v2, %v1131_v24  ;;  %vm212_vm1 = vcmp.eq.s32.totalorder %v1138_v27, %v1131_v24 }
  0xc6   : > { %v675_v37 = vsel %vm249_vm4, 1.0, %v989_v29  ;;  %v676_v38 = vsel %vm250_vm5, 1.0, %v989_v29  ;;  %vm179_vm4 = vcmp.eq.s32.totalorder %v1133_v2, %v1129_v20  ;;  %vm180_vm5 = vcmp.eq.s32.totalorder %v1138_v27, %v1129_v20 }
  0xc7   : > { %v267_v42 = vadd.f32 %v675_v37, %v231_v34  ;;  %v268_v43 = vadd.f32 %v676_v38, %v232_v35  ;;  %v667_v7 = vsel %vm211_vm0, 1.0, %v989_v29  ;;  %v668_v8 = vsel %vm212_vm1, 1.0, %v989_v29 }
  0xc8   : > { %v665_v11 = vsel %vm179_vm4, 1.0, %v989_v29  ;;  %v666_v12 = vsel %vm180_vm5, 1.0, %v989_v29  ;;  %v229_v14 = vadd.f32 %v667_v7, %v661_v9  ;;  %v230_v15 = vadd.f32 %v668_v8, %v662_v10 }
  0xc9   : > { %v1135_v25 = vpop.permute.xlu1 %209  ;;  %v279_v26 = vpop.permute.xlu0 %278 }
  0xca   : > { %vm285_vm6 = vcmp.eq.s32.totalorder %v1133_v2, %v279_v26  ;;  %vm286_vm7 = vcmp.eq.s32.totalorder %v1138_v27, %v279_v26 }
  0xcb   : > { %v681_v40 = vsel %vm285_vm6, 1.0, %v989_v29  ;;  %v682_v41 = vsel %vm286_vm7, 1.0, %v989_v29  ;;  %vm215_vm6 = vcmp.eq.s32.totalorder %v1133_v2, %v1135_v25  ;;  %vm216_vm7 = vcmp.eq.s32.totalorder %v1138_v27, %v1135_v25 }
  0xcc   : > { %v303_v47 = vadd.f32 %v681_v40, %v267_v42  ;;  %v304_v48 = vadd.f32 %v682_v41, %v268_v43  ;;  %v671_v1 = vsel %vm215_vm6, 1.0, %v989_v29  ;;  %v672_v13 = vsel %vm216_vm7, 1.0, %v989_v29 }
  0xcd   : > { %v233_v19 = vadd.f32 %v671_v1, %v665_v11  ;;  %v234_v20 = vadd.f32 %v672_v13, %v666_v12 }
  0xce   : > { %v1144_v3 = vpop.permute.xlu1 %239  ;;  %v315_v28 = vpop.permute.xlu0 %314 }
  0xcf   : > { %vm321_vm8 = vcmp.eq.s32.totalorder %v1133_v2, %v315_v28  ;;  %vm322_vm9 = vcmp.eq.s32.totalorder %v1138_v27, %v315_v28 }
  0xd0   : > { %v687_v44 = vsel %vm321_vm8, 1.0, %v989_v29  ;;  %v688_v45 = vsel %vm322_vm9, 1.0, %v989_v29  ;;  %vm247_vm8 = vcmp.eq.s32.totalorder %v1133_v2, %v1144_v3  ;;  %vm248_vm9 = vcmp.eq.s32.totalorder %v1138_v27, %v1144_v3 }
  0xd1   : > { %v339_v52 = vadd.f32 %v687_v44, %v303_v47  ;;  %v340_v53 = vadd.f32 %v688_v45, %v304_v48  ;;  %v673_v16 = vsel %vm247_vm8, 1.0, %v989_v29  ;;  %v674_v17 = vsel %vm248_vm9, 1.0, %v989_v29 }
  0xd2   : > { %v1154_v36 = vpop.permute.xlu1 %245  ;;  %v265_v23 = vadd.f32 %v673_v16, %v229_v14  ;;  %v266_v24 = vadd.f32 %v674_v17, %v230_v15 }
  0xd3   : > { %v351_v39 = vpop.permute.xlu0 %350 }
  0xd4   : > { %vm357_vm10 = vcmp.eq.s32.totalorder %v1133_v2, %v351_v39  ;;  %vm358_vm11 = vcmp.eq.s32.totalorder %v1138_v27, %v351_v39 }
  0xd5   : > { %v693_v50 = vsel %vm357_vm10, 1.0, %v989_v29  ;;  %v694_v51 = vsel %vm358_vm11, 1.0, %v989_v29 }
  0xd6   : > { %v375_v57 = vadd.f32 %v693_v50, %v339_v52  ;;  %v376_v58 = vadd.f32 %v694_v51, %v340_v53 }
  0xd7   : > { %v276_v46 = vpop.permute.xlu1 %275 }
  0xd8   : > { %v387_v49 = vpop.permute.xlu0 %386  ;;  %vm283_vm10 = vcmp.eq.s32.totalorder %v1133_v2, %v276_v46  ;;  %vm284_vm11 = vcmp.eq.s32.totalorder %v1138_v27, %v276_v46 }
  0xd9   : > { %vm393_vm12 = vcmp.eq.s32.totalorder %v1133_v2, %v387_v49  ;;  %vm394_vm13 = vcmp.eq.s32.totalorder %v1138_v27, %v387_v49  ;;  %v679_v21 = vsel %vm283_vm10, 1.0, %v989_v29  ;;  %v680_v22 = vsel %vm284_vm11, 1.0, %v989_v29 }
  0xda   : > { %v699_v54 = vsel %vm393_vm12, 1.0, %v989_v29  ;;  %v700_v55 = vsel %vm394_vm13, 1.0, %v989_v29  ;;  %vm251_vm12 = vcmp.eq.s32.totalorder %v1133_v2, %v1154_v36  ;;  %vm252_vm13 = vcmp.eq.s32.totalorder %v1138_v27, %v1154_v36 }
  0xdb   : > { %v1172_v56 = vpop.permute.xlu1 %281  ;;  %v411_v60 = vadd.f32 %v699_v54, %v375_v57  ;;  %v412_v61 = vadd.f32 %v700_v55, %v376_v58  ;;  %v677_v25 = vsel %vm251_vm12, 1.0, %v989_v29  ;;  %v678_v26 = vsel %vm252_vm13, 1.0, %v989_v29 }
  0xdc   : > { %v301_v31 = vadd.f32 %v679_v21, %v265_v23  ;;  %v302_v32 = vadd.f32 %v680_v22, %v266_v24  ;;  %vm287_vm2 = vcmp.eq.s32.totalorder %v1133_v2, %v1172_v56  ;;  %vm288_vm3 = vcmp.eq.s32.totalorder %v1138_v27, %v1172_v56 }
  0xdd   : > { %v423_v59 = vpop.permute.xlu0 %422  ;;  %v269_v36 = vadd.f32 %v677_v25, %v233_v19  ;;  %v270_v37 = vadd.f32 %v678_v26, %v234_v20  ;;  %v683_v40 = vsel %vm287_vm2, 1.0, %v989_v29  ;;  %v684_v41 = vsel %vm288_vm3, 1.0, %v989_v29 }
  0xde   : > { %vm429_vm14 = vcmp.eq.s32.totalorder %v1133_v2, %v423_v59  ;;  %vm430_vm15 = vcmp.eq.s32.totalorder %v1138_v27, %v423_v59 }
  0xdf   : > { %v705_v62 = vsel %vm429_vm14, 1.0, %v989_v29  ;;  %v706_v63 = vsel %vm430_vm15, 1.0, %v989_v29  ;;  %v305_v53 = vadd.f32 %v683_v40, %v269_v36  ;;  %v306_v54 = vadd.f32 %v684_v41, %v270_v37 }
  0xe0   : > { %v447_v0 = vadd.f32 %v705_v62, %v411_v60  ;;  %v312_v4 = vpop.permute.xlu1 %311  ;;  %v448_v5 = vadd.f32 %v706_v63, %v412_v61 }
  0xe1   : > { %vm319_vm14 = vcmp.eq.s32.totalorder %v1133_v2, %v312_v4  ;;  %vm320_vm15 = vcmp.eq.s32.totalorder %v1138_v27, %v312_v4  ;;  %v420_v33 = vpop.permute.xlu0 %419 }
  0xe2   : > { %552 = vmatprep.mubr.f32.mxu1 %v448_v5  ;;  %v685_v3 = vsel %vm319_vm14, 1.0, %v989_v29  ;;  %v686_v28 = vsel %vm320_vm15, 1.0, %v989_v29  ;;  %vm427_vm4 = vcmp.eq.s32.totalorder %v1133_v2, %v420_v33  ;;  %vm428_vm5 = vcmp.eq.s32.totalorder %v1138_v27, %v420_v33 }
  0xe3   : > { %553 = vmatmul.mubr.f32.vlgmr.msra.gmra.mrb[0].mxu1 %v447_v0  ;;  %v337_v38 = vadd.f32 %v685_v3, %v301_v31  ;;  %v338_v39 = vadd.f32 %v686_v28, %v302_v32  ;;  %v703_v47 = vsel %vm427_vm4, 1.0, %v989_v29  ;;  %v704_v48 = vsel %vm428_vm5, 1.0, %v989_v29 }
  0xe4   : > { %v1190_v6 = vpop.permute.xlu1 %317 }
  0xe5   : > { %vm323_vm6 = vcmp.eq.s32.totalorder %v1133_v2, %v1190_v6  ;;  %vm324_vm7 = vcmp.eq.s32.totalorder %v1138_v27, %v1190_v6 }
  0xe6   : > { %v689_v49 = vsel %vm323_vm6, 1.0, %v989_v29  ;;  %v690_v50 = vsel %vm324_vm7, 1.0, %v989_v29 }
  0xe7   : > { %v341_v60 = vadd.f32 %v689_v49, %v305_v53  ;;  %v342_v61 = vadd.f32 %v690_v50, %v306_v54 }
  0xe9   : > { %v348_v18 = vpop.permute.xlu1 %347 }
  0xea   : > { %vm355_vm0 = vcmp.eq.s32.totalorder %v1133_v2, %v348_v18  ;;  %vm356_vm1 = vcmp.eq.s32.totalorder %v1138_v27, %v348_v18 }
  0xeb   : > { %v691_v34 = vsel %vm355_vm0, 1.0, %v989_v29  ;;  %v692_v35 = vsel %vm356_vm1, 1.0, %v989_v29 }
  0xec   : > { %v373_v42 = vadd.f32 %v691_v34, %v337_v38  ;;  %v374_v43 = vadd.f32 %v692_v35, %v338_v39 }
  0xed   : > { %v354_v30 = vpop.permute.xlu1 %353 }
  0xee   : > { %vm359_vm8 = vcmp.eq.s32.totalorder %v1133_v2, %v354_v30  ;;  %vm360_vm9 = vcmp.eq.s32.totalorder %v1138_v27, %v354_v30 }
  0xef   : > { %v695_v55 = vsel %vm359_vm8, 1.0, %v989_v29  ;;  %v696_v56 = vsel %vm360_vm9, 1.0, %v989_v29 }
  0xf0   : > { %v377_v0 = vadd.f32 %v695_v55, %v341_v60  ;;  %v378_v4 = vadd.f32 %v696_v56, %v342_v61 }
  0xf2   : > { %v384_v44 = vpop.permute.xlu1 %383 }
  0xf3   : > { %vm391_vm10 = vcmp.eq.s32.totalorder %v1133_v2, %v384_v44  ;;  %vm392_vm11 = vcmp.eq.s32.totalorder %v1138_v27, %v384_v44 }
  0xf4   : > { %v697_v45 = vsel %vm391_vm10, 1.0, %v989_v29  ;;  %v698_v46 = vsel %vm392_vm11, 1.0, %v989_v29 }
  0xf5   : > { %v409_v51 = vadd.f32 %v697_v45, %v373_v42  ;;  %v410_v52 = vadd.f32 %v698_v46, %v374_v43 }
  0xf6   : > { %v390_v57 = vpop.permute.xlu1 %389 }
  0xf7   : > { %v445_v58 = vadd.f32 %v703_v47, %v409_v51  ;;  %vm395_vm12 = vcmp.eq.s32.totalorder %v1133_v2, %v390_v57  ;;  %vm396_vm13 = vcmp.eq.s32.totalorder %v1138_v27, %v390_v57  ;;  %v446_v59 = vadd.f32 %v704_v48, %v410_v52 }
  0xf8   : > { %v701_v62 = vsel %vm395_vm12, 1.0, %v989_v29  ;;  %v702_v63 = vsel %vm396_vm13, 1.0, %v989_v29 }
  0xf9   : > { %547 = vmatprep.mubr.f32.mxu0 %v446_v59  ;;  %v413_v6 = vadd.f32 %v701_v62, %v377_v0  ;;  %v414_v7 = vadd.f32 %v702_v63, %v378_v4 }
  0xfa   : > { %548 = vmatmul.mubr.f32.vlgmr.msra.gmra.mrb[0].mxu0 %v445_v58 }
  0xfb   : > { %v426_v5 = vpop.permute.xlu1 %425 }
  0xfc   : > { %vm431_vm14 = vcmp.eq.s32.totalorder %v1133_v2, %v426_v5  ;;  %vm432_vm15 = vcmp.eq.s32.totalorder %v1138_v27, %v426_v5 }
  0xfd   : > { %v707_v8 = vsel %vm431_vm14, 1.0, %v989_v29  ;;  %v708_v9 = vsel %vm432_vm15, 1.0, %v989_v29 }
  0xfe   : > { %v449_v10 = vadd.f32 %v707_v8, %v413_v6  ;;  %v450_v11 = vadd.f32 %v708_v9, %v414_v7 }
 0x100   : > { %557 = vmatprep.mubr.f32.mxu1 %v450_v11 }
 0x101   : > { %558 = vmatmul.mubr.f32.gmra.mrb[2].mxu1 %v449_v10 }
 0x1b6   : > { %v748_v12 = vpop.f32.mrb[0].mxu1 }
 0x1b7   : > { %v749_v1 = vpop.f32.mrb[1].mxu1 }
 0x1b8   : > { %v750_v13 = vadd.f32 %v749_v1, %v748_v12 }
 0x1ba   : > { %564 = vst [vmem:[%s152_s25 + $0x8] sm:$0xff] %v750_v13 }
 0x1cd   : > { %v745_v2 = vpop.f32.mrb[0].mxu0 }
 0x1ce   : > { %v746_v14 = vpop.f32.mrb[1].mxu0 }
 0x1cf   : > { %v747_v27 = vadd.f32 %v746_v14, %v745_v2 }
 0x1d1   : > { %563 = vst [vmem:[%s152_s25] sm:$0xff] %v747_v27 }
 0x1d4   : > { %v751_v29 = vpop.f32.mrb[2].mxu1 }
 0x1d5   : > { %v752_v15 = vpop.f32.mrb[3].mxu1 }
 0x1d6   : > { %v753_v16 = vadd.f32 %v752_v15, %v751_v29 }
 0x1d8   : > { %565 = vst [vmem:[%s152_s25 + $0x10] sm:$0xff] %v753_v16 }
 0x1d9   : > { %923 = shalt.err (!%p920_p7)
}
 0x1da   : > { %s924_s7 = scalar_lea.hbm %s1267_s30, 384  ;;  %s928_s16 = scalar_lea.hbm %s1312_s2, 768 }
 0x1db   : > { %p925_p8 = scmp.ne.s32.totalorder %s1267_s30, %s924_s7  ;;  %p929_p1 = scmp.lt.u32.totalorder %s1267_s30, %s1312_s2 }
 0x1dc   : > { %p930_p0 = scmp.lt.u32.totalorder %s928_s16, %s924_s7  ;;  %p932_p6 = scmp.lt.u32.totalorder %s924_s7, %s1267_s30 }
 0x1dd   : > { %p926_p11 = pnand %p925_p8, %p1323_p9 }
 0x1de   : > { %p931_p5 = por %p930_p0, %p929_p1 }
 0x1df   : > { %p927_p13 = pneg %p926_p11 }
 0x1e0   : > { %p933_p10 = por %p932_p6, %p931_p5 }
 0x1e2   : > { %p934_p12 = pnand %p933_p10, %p927_p13 }
 0x1e4   : > { %937 = shalt.err (!%p934_p12)
}
 0x1e5   : > { %s991_s23 = smov 128   ;;  %s992_s21 = smov 8  }
 0x1e6   : > { %807 = dma.vmem_to_hbm [thread:$0]  (%p1323_p9), %s1262_s27, 384, %s1267_s30, %s1269_s3, %s991_s23, %s991_s23, %s992_s21  }
 0x1e7 PF: > { %p819_p2 = scmp.ge.s32.totalorder %s976_s12, 2  ;;  %s595_s24 = sand.u32 1, %s964_s9  }
 0x1e8   : > { %p1324_p3 = scmp.ne.s32.totalorder %s1317_s20, 0  ;;  %s596_s25 = scalar_lea.sflag [#allocation4], %s595_s24 }
 0x1ea   : > { %p814_p4 = pnand %p819_p2, %p1324_p3 }
 0x1ec   : > { %959 = dma.done.wait (!%p814_p4), %s596_s25, 384  }
 0x1ed   : > { %961 = vsyncadd (!%p814_p4), %s596_s25, 4294966912  ;;  %p13_p7 = scmp.ge.s32.totalorder %s1033_s15, 4   ;;  %s1325_s9 = smov %s968_s10 }
 0x1ee   : > { %s1326_s10 = smov %s972_s11  ;;  %s1327_s11 = smov %s1044_s18 }
 0x1ef   : > { %s1328_s12 = smov %s1033_s15  ;;  %15 = sbr.rel (!%p13_p7) target bundleno = 4 (0x4), region = 68 }
 0x1f6   :  { %601 = vsyncpa [#allocation3], 1 }
 0x1f7   :  { %603 = vsyncpa [#allocation3 + $0x1], 1 }
 0x1f8   :  { %604 = vsyncpa [#allocation4], 1 }
 0x1f9   :  { %606 = vsyncpa [#allocation4 + $0x1], 1 }

</bundles_post_ra>
